<compile_context>
chip_gen: v6e
topology: v6e:2x2x1
jax: 0.10.0
libtpu: 0.0.40
codegen_flags: <defaults>
</compile_context>

<pallas_src>
import jax
import jax.numpy as jnp
from jax import lax
from jax.experimental import pallas as pl
from jax.experimental.pallas import tpu as pltpu


# Budget for the double-buffered (x-block + out-block) working set: ~1/2 of the
# default scoped VMEM on v6e/v7x (32 MiB) and safely under v5e's 16 MiB default
# once we raise vmem_limit_bytes explicitly (v5e physical VMEM is 128 MiB).
_BLOCK_BUDGET_BYTES = 16 * 1024 * 1024


def _outconv_kernel(x_ref, w_ref, b_ref, o_ref):
    # x_ref: (TB, C_in, TL), w_ref: (C_out, C_in), b_ref: (C_out, 1),
    # o_ref: (TB, C_out, TL).  Kernel is HBM-bound; the matmul is incidental.
    x = x_ref[...]
    w = w_ref[...]
    tb = x.shape[0]
    wb = jnp.broadcast_to(w[None], (tb,) + w.shape)          # (TB, C_out, C_in)
    acc = lax.dot_general(
        wb, x,
        dimension_numbers=(((2,), (1,)), ((0,), (0,))),       # batch over TB
        preferred_element_type=jnp.float32)                   # (TB, C_out, TL)
    o_ref[...] = (acc + b_ref[...][None]).astype(o_ref.dtype)


def _choose_tiles(B, C_in, C_out, L, itemsize,
                  block_budget_bytes=_BLOCK_BUDGET_BYTES):
    """Pick (TB, TL) so 2 double-buffers x (x-block + out-block) stay within the
    VMEM budget while per-step DMA stays large enough to hide step overhead."""
    per_col = (C_in + C_out) * itemsize          # bytes per (batch-row, column)
    max_cols = max(128, block_budget_bytes // (2 * per_col))  # TB*TL budget

    if L <= max_cols:
        TL = L                                   # full extent: exempt from lane rule
        TB = max(1, min(B, max_cols // max(L, 1)))
    else:
        TL = max(128, (max_cols // 128) * 128)   # lane-aligned tile (multiple of 128)
        TB = 1

    # v7x megacore: for non-trivial problems make sure >= 2 parallel grid steps
    # exist so both TensorCores get work.
    big = B * L * per_col >= (1 << 20)
    if big and pl.cdiv(B, TB) * pl.cdiv(L, TL) < 2:
        if B >= 2:
            TB = pl.cdiv(B, 2)
        elif L >= 256:
            TL = max(128, ((TL // 2) // 128) * 128)   # ragged tail is masked
    return TB, TL


def outconv_forward(x, weight, bias):
    """x: (B, C_in, L), weight: (C_out, C_in, 1), bias: (C_out,)."""
    B, C_in, L = x.shape
    C_out = weight.shape[0]
    itemsize = jnp.dtype(x.dtype).itemsize

    # Tiny param reshapes only (no re-streaming of x through HBM).
    w2d = weight[:, :, 0]                  # (C_out, C_in)
    b2d = bias.reshape(C_out, 1)           # (C_out, 1) — broadcasts along lanes

    TB, TL = _choose_tiles(B, C_in, C_out, L, itemsize)
    grid = (pl.cdiv(B, TB), pl.cdiv(L, TL))

    # Explicit VMEM limit sized from the actual double-buffered block footprint
    # (floor at the 32 MiB default, cap safely under v7x's 64 MiB physical VMEM).
    x_blk = TB * C_in * TL * itemsize
    o_blk = TB * C_out * TL * itemsize
    param_bytes = (C_out * C_in + C_out) * itemsize
    footprint = 2 * (x_blk + o_blk) + 2 * param_bytes
    vmem_limit = int(min(48 << 20, max(32 << 20, footprint + (4 << 20))))

    cost = pl.CostEstimate(
        flops=2 * B * L * C_in * C_out,
        transcendentals=0,
        bytes_accessed=itemsize * (B * C_in * L + B * C_out * L
                                   + C_in * C_out + C_out),
    )

    out = pl.pallas_call(
        _outconv_kernel,
        out_shape=jax.ShapeDtypeStruct((B, C_out, L), x.dtype),
        grid_spec=pltpu.PrefetchScalarGridSpec(
            num_scalar_prefetch=0,
            grid=grid,
            in_specs=[
                # x: TB batch rows, one L tile.
                pl.BlockSpec((TB, C_in, TL), lambda b, l: (b, 0, l)),
                # weight / bias: resident across the whole grid.
                pl.BlockSpec((C_out, C_in), lambda b, l: (0, 0)),
                pl.BlockSpec((C_out, 1), lambda b, l: (0, 0)),
            ],
            out_specs=pl.BlockSpec((TB, C_out, TL), lambda b, l: (b, 0, l)),
        ),
        compiler_params=pltpu.CompilerParams(
            dimension_semantics=("parallel", "parallel"),
            vmem_limit_bytes=vmem_limit),
        cost_estimate=cost,
    )(x, w2d, b2d)

    return out


def init_outconv_params(key, in_channels, out_channels, kernel_size=1):
    """Deterministic init mirroring nn.Conv1d defaults (uniform +/- 1/sqrt(fan_in))."""
    kw, kb = jax.random.split(key)
    fan_in = in_channels * kernel_size
    bound = 1.0 / jnp.sqrt(fan_in)
    weight = jax.random.uniform(
        kw, (out_channels, in_channels, kernel_size),
        minval=-bound, maxval=bound, dtype=jnp.float32)
    bias = jax.random.uniform(
        kb, (out_channels,), minval=-bound, maxval=bound, dtype=jnp.float32)
    return weight, bias


if __name__ == "__main__":
    key = jax.random.PRNGKey(0)
    k_x, k_p = jax.random.split(key)

    B, C_in, C_out, L = 2, 4, 8, 16
    x = jax.random.normal(k_x, (B, C_in, L), dtype=jnp.float32)
    weight, bias = init_outconv_params(k_p, C_in, C_out)

    out = outconv_forward(x, weight, bias)
    out = jax.block_until_ready(out)

    # Reference check in plain JAX (einsum over channels + bias).
    ref = jnp.einsum("oc,bcl->bol", weight[:, :, 0], x) + bias[None, :, None]
    assert out.shape == (B, C_out, L)
    assert jnp.allclose(out, ref, atol=1e-5, rtol=1e-5)

    print("KERNEL_OK")
</pallas_src>

<mosaic_0001>
module attributes {stable_mosaic.version = 11 : i64} {
  func.func @_outconv_kernel(%arg0: i32, %arg1: i32, %arg2: memref<2x4x16xf32, #tpu.memory_space<vmem>>, %arg3: memref<8x4xf32, #tpu.memory_space<vmem>>, %arg4: memref<8x1xf32, #tpu.memory_space<vmem>>, %arg5: memref<2x8x16xf32, #tpu.memory_space<vmem>>) attributes {dimension_semantics = [#tpu.dimension_semantics<parallel>, #tpu.dimension_semantics<parallel>], iteration_bounds = array<i64: 1, 1>, scalar_prefetch = 0 : i64, scratch_operands = 0 : i64, tpu.core_type = #tpu.core_type<tc>, window_params = [{transform_indices = @transform_0, window_bounds = array<i64: 2, 4, 16>}, {pipeline_mode = #tpu.pipeline_mode<synchronous>, transform_indices = @transform_1, window_bounds = array<i64: 8, 4>}, {pipeline_mode = #tpu.pipeline_mode<synchronous>, transform_indices = @transform_2, window_bounds = array<i64: 8, 1>}, {transform_indices = @transform_3, window_bounds = array<i64: 2, 8, 16>}]} {
    %c0 = arith.constant 0 : index
    %c0_0 = arith.constant 0 : index
    %c0_1 = arith.constant 0 : index
    %0 = vector.load %arg2[%c0, %c0_0, %c0_1] : memref<2x4x16xf32, #tpu.memory_space<vmem>>, vector<2x4x16xf32>
    %c0_2 = arith.constant 0 : index
    %c0_3 = arith.constant 0 : index
    %1 = vector.load %arg3[%c0_2, %c0_3] : memref<8x4xf32, #tpu.memory_space<vmem>>, vector<8x4xf32>
    %2 = vector.shape_cast %1 : vector<8x4xf32> to vector<1x8x4xf32>
    %3 = vector.shape_cast %2 : vector<1x8x4xf32> to vector<1x8x4xf32>
    %4 = vector.broadcast %3 : vector<1x8x4xf32> to vector<2x8x4xf32>
    %cst = arith.constant dense<0.000000e+00> : vector<2x8x16xf32>
    %5 = tpu.matmul %4, %0, %cst {dimension_numbers = #tpu.dot_dimension_numbers<[2], [1], [1], [2], [0, 0, 0, 1, 1, 2], [0], [0]>} : vector<2x8x4xf32>, vector<2x4x16xf32>, vector<2x8x16xf32> -> vector<2x8x16xf32>
    %c0_4 = arith.constant 0 : index
    %c0_5 = arith.constant 0 : index
    %6 = vector.load %arg4[%c0_4, %c0_5] : memref<8x1xf32, #tpu.memory_space<vmem>>, vector<8x1xf32>
    %7 = vector.shape_cast %6 : vector<8x1xf32> to vector<1x8x1xf32>
    %8 = vector.broadcast %7 : vector<1x8x1xf32> to vector<2x8x16xf32>
    %9 = arith.addf %5, %8 : vector<2x8x16xf32>
    %c0_6 = arith.constant 0 : index
    %c0_7 = arith.constant 0 : index
    %c0_8 = arith.constant 0 : index
    %10 = vector.load %arg5[%c0_6, %c0_7, %c0_8] : memref<2x8x16xf32, #tpu.memory_space<vmem>>, vector<2x8x16xf32>
    tpu.vector_store %arg5[%c0_6, %c0_7, %c0_8], %9 {strides = array<i32>} : memref<2x8x16xf32, #tpu.memory_space<vmem>>, vector<2x8x16xf32>,
    return
  }
  func.func @transform_0(%arg0: i32, %arg1: i32) -> (i32, i32, i32) {
    %c0_i32 = arith.constant 0 : i32
    %c0_i32_0 = arith.constant 0 : i32
    return %arg0, %c0_i32, %arg1 : i32, i32, i32
  }
  func.func @transform_1(%arg0: i32, %arg1: i32) -> (i32, i32) {
    %c0_i32 = arith.constant 0 : i32
    %c0_i32_0 = arith.constant 0 : i32
    %c0_i32_1 = arith.constant 0 : i32
    return %c0_i32, %c0_i32_0 : i32, i32
  }
  func.func @transform_2(%arg0: i32, %arg1: i32) -> (i32, i32) {
    %c0_i32 = arith.constant 0 : i32
    %c0_i32_0 = arith.constant 0 : i32
    %c0_i32_1 = arith.constant 0 : i32
    return %c0_i32, %c0_i32_0 : i32, i32
  }
  func.func @transform_3(%arg0: i32, %arg1: i32) -> (i32, i32, i32) {
    %c0_i32 = arith.constant 0 : i32
    %c0_i32_0 = arith.constant 0 : i32
    return %arg0, %c0_i32, %arg1 : i32, i32, i32
  }
}

</mosaic_0001>

<bundles_post_ra>
// kernel: tpu_custom_call.1
= control target key start
LH: loop header
LB: loop body
LE: loop exit
PB: predicated region body
PF: predicated region fallthrough
CT: control target
= control target key end

     0   :  { %vm28_vm0 = vcmask 1043456   ;;  %v241_v1 = vmov 0.0   ;;  %vm24_vm1 = vcmask 31744   ;;  %vm242_vm2 = vmmov 0   ;;  %s282_s0 = inlined_call_operand.vmem [shape: f32[2,4,16], index: 0, kind: input, shape index: {}]   ;;  %s283_s1 = inlined_call_operand.vmem [shape: f32[8,4], index: 1, kind: input, shape index: {}]   ;;  %s284_s2 = inlined_call_operand.vmem [shape: f32[8,1], index: 2, kind: input, shape index: {}]   ;;  %s285_s3 = inlined_call_operand.hbm [shape: f32[2,8,16], index: 3, kind: output, shape index: {}]  }
   0x1   :  { %v15_v0 = vld [vmem:[%s282_s0] sm:$0xf]  ;;  %202 = vmatprep.subr.mxu0 %v241_v1  ;;  %207 = vmatprep.subr.mxu1 %v241_v1  ;;  %v16_v2 = vld [vmem:[%s282_s0 + $0x4] sm:$0xf] }
   0x2   :  { %v17_v3 = vld [vmem:[%s283_s1] sm:$0xff]  ;;  %203 = vmatpush3.msk.msra.mxu0 %vm28_vm0, %v15_v0  ;;  %204 = vmatprep.mubr.msk.f32.mxu0 %vm242_vm2, %v241_v1 }
   0x3   :  { %8 = vsyncpa [#allocation3], 0  ;;  %208 = vmatpush3.msk.msra.mxu1 %vm28_vm0, %v16_v2  ;;  %209 = vmatprep.mubr.msk.f32.mxu1 %vm242_vm2, %v241_v1  ;;  %v18_v4 = vld [vmem:[%s284_s2] sm:$0xff]  ;;  %v243_v5 = vmov 0   ;;  %s244_s0 = smov [#allocation2]   ;;  %vm175_vm3 = vcmask 130048  }
   0x4   :  { %205 = vmatmul.mubr.msk.f32.vlgmr.msra.gmra.mxu0 %vm24_vm1, %v17_v3  ;;  %210 = vmatmul.mubr.msk.f32.vlgmr.msra.gmra.mxu1 %vm24_vm1, %v17_v3  ;;  %s183_s20 = sshll.u32 %s244_s0, 4  ;;  %s184_s20 = int_to_ptr.vmem [resolvable:$true] %s183_s20 }
   0x5   :  { %218 = vset.pattern.permute.xlu0 %v243_v5  ;;  %s219_s1 = scalar_lea.vmem %s184_s20, 256  ;;  %p224_p1 = scmp.lt.s32.totalorder %s184_s20, %s184_s20 }
   0x6   :  { %21 = vperm.xlu0 %218, %v18_v4   ;;  %p220_p0 = scmp.ne.s32.totalorder %s184_s20, %s219_s1  ;;  %p225_p2 = scmp.lt.s32.totalorder %s219_s1, %s219_s1 }
   0x8   :  { %p226_p3 = por %p225_p2, %p224_p1 }
   0xa   :  { %p227_p4 = pnand %p226_p3, %p220_p0 }
  0x81   :  { %v22_v6 = vpop.permute.xlu0 %21 }
  0xc4   :  { %v98_v7 = vpop.f32.mrf.mxu0  ;;  %v171_v8 = vpop.f32.mrf.mxu1 }
  0xc5   :  { %v99_v9 = vadd.f32 %v98_v7, %v22_v6  ;;  %v172_v10 = vadd.f32 %v171_v8, %v22_v6 }
  0xc6   :  { %v206_v11 = vpop.f32.mrf.mxu0  ;;  %v211_v12 = vpop.f32.mrf.mxu1 }
  0xc7   :  { %176 = vst.msk [vmem:[#allocation2] sm:$0xff] %vm175_vm3, %v99_v9  ;;  %177 = vst.msk [vmem:[#allocation2 + $0x8] sm:$0xff] %vm175_vm3, %v172_v10 }
  0xc8   :  { %230 = shalt.err (!%p227_p4)
}
  0xc9   :  { %s245_s2 = smov 128   ;;  %s246_s21 = smov 8  }
  0xca   :  { %189 = dma.vmem_to_hbm [thread:$0]  %s184_s20, 256, %s285_s3, [#allocation3], %s245_s2, %s245_s2, %s246_s21  }
  0xcb   :  { %239 = dma.done.wait [#allocation3], 256  }
  0xcc   :  { %240 = vsyncadd [#allocation3], 4294967040 }
  0xcd   :  { %193 = vsyncpa [#allocation3], 1 }

</bundles_post_ra>
